<compile_context>
chip_gen: v6e
topology: v6e:2x2x1
jax: 0.10.0
libtpu: 0.0.40
codegen_flags: <defaults>
</compile_context>

<pallas_src>
import numpy as np
import jax
import jax.numpy as jnp
from jax.experimental import pallas as pl
from jax.experimental.pallas import tpu as pltpu


def mixconv_channel_split(c2, k=(1, 3), equal_ch=True):
    """Replicates MixConv2d.__init__'s split of c2 output channels over groups."""
    groups = len(k)
    if equal_ch:
        idx = np.floor(np.linspace(0, groups - 1e-6, c2)).astype(np.int64)
        c_ = [int((idx == g).sum()) for g in range(groups)]
    else:
        b = [c2] + [0] * groups
        a = np.eye(groups + 1, groups, k=-1)
        a -= np.roll(a, 1, axis=1)
        a *= np.array(k) ** 2
        a[0] = 1
        c_ = [int(v) for v in np.linalg.lstsq(a, b, rcond=None)[0].round()]
    return c_


def _pick_hw_tile(hw, per_col_bytes, vmem_budget=12 * 1024 * 1024):
    """Largest lane-dense (multiple-of-128) tile of the flattened H*W axis that
    keeps the double-buffered working set inside a conservative VMEM budget
    (safe for v5e 16 MiB / v6e 32 MiB / v7x 32 MiB default scoped VMEM)."""
    if hw % 128 != 0:
        return hw  # block == full dim is always legal; small feature maps only
    best = 128
    for cand in (128, 256, 512, 1024, 2048, 4096):
        if hw % cand == 0 and cand * per_col_bytes <= vmem_budget:
            best = cand
    return best


def _make_mixconv_kernel(group_meta, negative_slope):
    """group_meta: tuple of (c_out_g, patch_depth_g, channel_offset_g)."""
    n_groups = len(group_meta)

    def kernel(*refs):
        p_refs = refs[:n_groups]                  # (1, patch_depth_g, hw_tile)
        w_refs = refs[n_groups:2 * n_groups]      # (c_g, patch_depth_g)
        scale_ref, bias_ref, xres_ref, out_ref = refs[2 * n_groups:]
        for g, (cg, _kd, off) in enumerate(group_meta):
            # Conv-as-matmul for this kernel-size group: (c_g, Kd) @ (Kd, hw_tile)
            y = jnp.dot(w_refs[g][...], p_refs[g][0],
                        preferred_element_type=jnp.float32)
            # Folded (inference) BatchNorm + LeakyReLU(0.1) + residual add.
            z = y * scale_ref[off:off + cg, :] + bias_ref[off:off + cg, :]
            z = jnp.where(z >= 0, z, negative_slope * z)
            z = z + xres_ref[0, off:off + cg, :].astype(jnp.float32)
            # Each group writes straight into its channel slice of the output
            # block -> torch.cat disappears (no separate concat kernel).
            out_ref[0, off:off + cg, :] = z.astype(out_ref.dtype)

    return kernel


def mixconv2d_forward(x, weights, bn_gamma, bn_beta, bn_mean, bn_var,
                      *, k=(1, 3), s=1, eps=1e-5, negative_slope=0.1):
    """Fused MixConv2d forward. x: (N, C1, H, W); weights[g]: (c_g, C1, k_g, k_g)."""
    # TODO(synk): stride s != 1 not supported (the original module's residual
    # add also breaks for s != 1, so s=1 is the only well-defined forward).
    assert s == 1
    n, c1, h, w = x.shape
    c2 = int(sum(int(wg.shape[0]) for wg in weights))
    assert c2 == c1, "MixConv2d's `x + ...` residual requires c2 == c1"
    hw = h * w
    itemsize = x.dtype.itemsize

    # ---- wrapper-side layout plumbing (lane-dense, im2col) -------------------
    maxpad = max(kg // 2 for kg in k)
    xpad = jnp.pad(x, ((0, 0), (0, 0), (maxpad, maxpad), (maxpad, maxpad)))

    patches, wflats, group_meta = [], [], []
    off = 0
    for wg, kg in zip(weights, k):
        cg = int(wg.shape[0])
        o = maxpad - kg // 2
        slabs = [xpad[:, :, o + dh:o + dh + h, o + dw:o + dw + w]
                 for dh in range(kg) for dw in range(kg)]
        # (N, C1, kg*kg, H, W) -> (N, C1*kg*kg, H*W); index order matches
        # weight.reshape(cg, C1*kg*kg) (ci-major, then dh, dw).
        p = jnp.stack(slabs, axis=2).reshape(n, c1 * kg * kg, hw)
        patches.append(p)
        wflats.append(wg.reshape(cg, c1 * kg * kg).astype(x.dtype))
        group_meta.append((cg, c1 * kg * kg, off))
        off += cg
    group_meta = tuple(group_meta)

    # TODO(synk): BatchNorm is applied in inference mode (running stats folded
    # into scale/bias); training-mode batch statistics are not computed.
    inv_std = 1.0 / jnp.sqrt(bn_var.astype(jnp.float32) + eps)
    scale = (bn_gamma.astype(jnp.float32) * inv_std).reshape(c2, 1)
    bias = (bn_beta.astype(jnp.float32)
            - bn_mean.astype(jnp.float32) * bn_gamma.astype(jnp.float32) * inv_std
            ).reshape(c2, 1)
    xres = x.reshape(n, c1, hw)

    # ---- grid / blocks -------------------------------------------------------
    per_col_bytes = 2 * itemsize * (sum(kd for _, kd, _ in group_meta) + c1 + c2)
    hw_tile = _pick_hw_tile(hw, per_col_bytes)
    grid = (n, hw // hw_tile)

    in_specs = (
        [pl.BlockSpec((1, kd, hw_tile), lambda b, t: (b, 0, t))
         for (_cg, kd, _off) in group_meta]                       # im2col patches
        + [pl.BlockSpec((cg, kd), lambda b, t: (0, 0))
           for (cg, kd, _off) in group_meta]                      # group weights
        + [pl.BlockSpec((c2, 1), lambda b, t: (0, 0)),            # BN scale
           pl.BlockSpec((c2, 1), lambda b, t: (0, 0)),            # BN bias
           pl.BlockSpec((1, c1, hw_tile), lambda b, t: (b, 0, t))]  # residual x
    )
    out_spec = pl.BlockSpec((1, c2, hw_tile), lambda b, t: (b, 0, t))

    flops = int(2 * n * hw * sum(cg * kd for cg, kd, _ in group_meta))
    bytes_accessed = int(
        sum(int(np.prod(p.shape)) for p in patches) * itemsize
        + sum(int(np.prod(wf.shape)) for wf in wflats) * itemsize
        + 2 * c2 * 4
        + n * c1 * hw * itemsize      # residual read
        + n * c2 * hw * itemsize)     # output write

    out = pl.pallas_call(
        _make_mixconv_kernel(group_meta, negative_slope),
        out_shape=jax.ShapeDtypeStruct((n, c2, hw), x.dtype),
        grid=grid,
        in_specs=in_specs,
        out_specs=out_spec,
        compiler_params=pltpu.CompilerParams(
            dimension_semantics=("parallel", "parallel")),
        cost_estimate=pl.CostEstimate(
            flops=flops, transcendentals=0, bytes_accessed=bytes_accessed),
    )(*patches, *wflats, scale, bias, xres)

    return out.reshape(n, c2, h, w)


def _reference(x, weights, gamma, beta, mean, var, *, k, eps=1e-5, slope=0.1):
    outs = []
    for wg, kg in zip(weights, k):
        pad = kg // 2
        outs.append(jax.lax.conv_general_dilated(
            x, wg, window_strides=(1, 1),
            padding=[(pad, pad), (pad, pad)],
            dimension_numbers=("NCHW", "OIHW", "NCHW"),
            precision=jax.lax.Precision.HIGHEST))
    y = jnp.concatenate(outs, axis=1)
    sc = (gamma / jnp.sqrt(var + eps))[None, :, None, None]
    bs = (beta - mean * gamma / jnp.sqrt(var + eps))[None, :, None, None]
    y = y * sc + bs
    y = jnp.where(y >= 0, y, slope * y)
    return x + y


if __name__ == "__main__":
    N, C1, H, W = 2, 16, 16, 16
    C2 = C1                       # residual add requires c2 == c1
    k = (1, 3)
    c_ = mixconv_channel_split(C2, k=k, equal_ch=True)   # -> [8, 8]

    keys = jax.random.split(jax.random.PRNGKey(0), 8)
    x = jax.random.normal(keys[0], (N, C1, H, W), dtype=jnp.float32)
    weights = [0.05 * jax.random.normal(keys[1 + g], (c_[g], C1, k[g], k[g]),
                                        dtype=jnp.float32)
               for g in range(len(k))]
    gamma = 1.0 + 0.1 * jax.random.normal(keys[3], (C2,), jnp.float32)
    beta = 0.1 * jax.random.normal(keys[4], (C2,), jnp.float32)
    mean = 0.1 * jax.random.normal(keys[5], (C2,), jnp.float32)
    var = 0.5 + jax.nn.softplus(jax.random.normal(keys[6], (C2,), jnp.float32))

    out = mixconv2d_forward(x, weights, gamma, beta, mean, var, k=k)
    out = jax.block_until_ready(out)

    ref = _reference(x, weights, gamma, beta, mean, var, k=k)
    assert out.shape == (N, C2, H, W)
    max_err = float(jnp.max(jnp.abs(out - ref)))
    assert jnp.allclose(out, ref, rtol=2e-2, atol=2e-2), max_err
    print("KERNEL_OK")
</pallas_src>

<mosaic_0001>
module attributes {stable_mosaic.version = 11 : i64} {
  func.func @kernel(%arg0: i32, %arg1: i32, %arg2: memref<1x16x256xf32, #tpu.memory_space<vmem>>, %arg3: memref<1x144x256xf32, #tpu.memory_space<vmem>>, %arg4: memref<8x16xf32, #tpu.memory_space<vmem>>, %arg5: memref<8x144xf32, #tpu.memory_space<vmem>>, %arg6: memref<16x1xf32, #tpu.memory_space<vmem>>, %arg7: memref<16x1xf32, #tpu.memory_space<vmem>>, %arg8: memref<1x16x256xf32, #tpu.memory_space<vmem>>, %arg9: memref<1x16x256xf32, #tpu.memory_space<vmem>>) attributes {dimension_semantics = [#tpu.dimension_semantics<parallel>, #tpu.dimension_semantics<parallel>], iteration_bounds = array<i64: 2, 1>, scalar_prefetch = 0 : i64, scratch_operands = 0 : i64, tpu.core_type = #tpu.core_type<tc>, window_params = [{transform_indices = @transform_0, window_bounds = array<i64: 1, 16, 256>}, {transform_indices = @transform_1, window_bounds = array<i64: 1, 144, 256>}, {pipeline_mode = #tpu.pipeline_mode<synchronous>, transform_indices = @transform_2, window_bounds = array<i64: 8, 16>}, {pipeline_mode = #tpu.pipeline_mode<synchronous>, transform_indices = @transform_3, window_bounds = array<i64: 8, 144>}, {pipeline_mode = #tpu.pipeline_mode<synchronous>, transform_indices = @transform_4, window_bounds = array<i64: 16, 1>}, {pipeline_mode = #tpu.pipeline_mode<synchronous>, transform_indices = @transform_5, window_bounds = array<i64: 16, 1>}, {transform_indices = @transform_6, window_bounds = array<i64: 1, 16, 256>}, {transform_indices = @transform_7, window_bounds = array<i64: 1, 16, 256>}]} {
    %c0 = arith.constant 0 : index
    %c0_0 = arith.constant 0 : index
    %0 = vector.load %arg4[%c0, %c0_0] : memref<8x16xf32, #tpu.memory_space<vmem>>, vector<8x16xf32>
    %c0_1 = arith.constant 0 : index
    %c0_2 = arith.constant 0 : index
    %c0_3 = arith.constant 0 : index
    %1 = vector.load %arg2[%c0_1, %c0_2, %c0_3] : memref<1x16x256xf32, #tpu.memory_space<vmem>>, vector<1x16x256xf32>
    %2 = vector.shape_cast %1 : vector<1x16x256xf32> to vector<16x256xf32>
    %cst = arith.constant dense<0.000000e+00> : vector<8x256xf32>
    %3 = tpu.matmul %0, %2, %cst {dimension_numbers = #tpu.dot_dimension_numbers<[1], [0], [0], [1], [0, 0, 1, 1], [], []>} : vector<8x16xf32>, vector<16x256xf32>, vector<8x256xf32> -> vector<8x256xf32>
    %c0_4 = arith.constant 0 : index
    %c0_5 = arith.constant 0 : index
    %4 = vector.load %arg6[%c0_4, %c0_5] : memref<16x1xf32, #tpu.memory_space<vmem>>, vector<8x1xf32>
    %5 = vector.broadcast %4 : vector<8x1xf32> to vector<8x256xf32>
    %6 = arith.mulf %3, %5 : vector<8x256xf32>
    %c0_6 = arith.constant 0 : index
    %c0_7 = arith.constant 0 : index
    %7 = vector.load %arg7[%c0_6, %c0_7] : memref<16x1xf32, #tpu.memory_space<vmem>>, vector<8x1xf32>
    %8 = vector.broadcast %7 : vector<8x1xf32> to vector<8x256xf32>
    %9 = arith.addf %6, %8 : vector<8x256xf32>
    %cst_8 = arith.constant 0.000000e+00 : f32
    %10 = vector.broadcast %cst_8 : f32 to vector<8x256xf32>
    %11 = arith.cmpf oge, %9, %10 : vector<8x256xf32>
    %cst_9 = arith.constant 1.000000e-01 : f32
    %12 = vector.broadcast %cst_9 : f32 to vector<8x256xf32>
    %13 = arith.mulf %12, %9 : vector<8x256xf32>
    %14 = arith.select %11, %9, %13 : vector<8x256xi1>, vector<8x256xf32>
    %c0_10 = arith.constant 0 : index
    %c0_11 = arith.constant 0 : index
    %c0_12 = arith.constant 0 : index
    %15 = vector.load %arg8[%c0_10, %c0_11, %c0_12] : memref<1x16x256xf32, #tpu.memory_space<vmem>>, vector<1x8x256xf32>
    %16 = vector.shape_cast %15 : vector<1x8x256xf32> to vector<8x256xf32>
    %17 = arith.addf %14, %16 : vector<8x256xf32>
    %c0_13 = arith.constant 0 : index
    %c0_14 = arith.constant 0 : index
    %c0_15 = arith.constant 0 : index
    %18 = vector.load %arg9[%c0_13, %c0_14, %c0_15] : memref<1x16x256xf32, #tpu.memory_space<vmem>>, vector<1x8x256xf32>
    %19 = vector.shape_cast %18 : vector<1x8x256xf32> to vector<8x256xf32>
    %20 = vector.shape_cast %17 : vector<8x256xf32> to vector<1x8x256xf32>
    tpu.vector_store %arg9[%c0_13, %c0_14, %c0_15], %20 {strides = array<i32>} : memref<1x16x256xf32, #tpu.memory_space<vmem>>, vector<1x8x256xf32>,
    %c0_16 = arith.constant 0 : index
    %c0_17 = arith.constant 0 : index
    %21 = vector.load %arg5[%c0_16, %c0_17] : memref<8x144xf32, #tpu.memory_space<vmem>>, vector<8x144xf32>
    %c0_18 = arith.constant 0 : index
    %c0_19 = arith.constant 0 : index
    %c0_20 = arith.constant 0 : index
    %22 = vector.load %arg3[%c0_18, %c0_19, %c0_20] : memref<1x144x256xf32, #tpu.memory_space<vmem>>, vector<1x144x256xf32>
    %23 = vector.shape_cast %22 : vector<1x144x256xf32> to vector<144x256xf32>
    %cst_21 = arith.constant dense<0.000000e+00> : vector<8x256xf32>
    %24 = tpu.matmul %21, %23, %cst_21 {dimension_numbers = #tpu.dot_dimension_numbers<[1], [0], [0], [1], [0, 0, 1, 1], [], []>} : vector<8x144xf32>, vector<144x256xf32>, vector<8x256xf32> -> vector<8x256xf32>
    %c8 = arith.constant 8 : index
    %c0_22 = arith.constant 0 : index
    %25 = vector.load %arg6[%c8, %c0_22] : memref<16x1xf32, #tpu.memory_space<vmem>>, vector<8x1xf32>
    %26 = vector.broadcast %25 : vector<8x1xf32> to vector<8x256xf32>
    %27 = arith.mulf %24, %26 : vector<8x256xf32>
    %c8_23 = arith.constant 8 : index
    %c0_24 = arith.constant 0 : index
    %28 = vector.load %arg7[%c8_23, %c0_24] : memref<16x1xf32, #tpu.memory_space<vmem>>, vector<8x1xf32>
    %29 = vector.broadcast %28 : vector<8x1xf32> to vector<8x256xf32>
    %30 = arith.addf %27, %29 : vector<8x256xf32>
    %cst_25 = arith.constant 0.000000e+00 : f32
    %31 = vector.broadcast %cst_25 : f32 to vector<8x256xf32>
    %32 = arith.cmpf oge, %30, %31 : vector<8x256xf32>
    %cst_26 = arith.constant 1.000000e-01 : f32
    %33 = vector.broadcast %cst_26 : f32 to vector<8x256xf32>
    %34 = arith.mulf %33, %30 : vector<8x256xf32>
    %35 = arith.select %32, %30, %34 : vector<8x256xi1>, vector<8x256xf32>
    %c0_27 = arith.constant 0 : index
    %c8_28 = arith.constant 8 : index
    %c0_29 = arith.constant 0 : index
    %36 = vector.load %arg8[%c0_27, %c8_28, %c0_29] : memref<1x16x256xf32, #tpu.memory_space<vmem>>, vector<1x8x256xf32>
    %37 = vector.shape_cast %36 : vector<1x8x256xf32> to vector<8x256xf32>
    %38 = arith.addf %35, %37 : vector<8x256xf32>
    %c0_30 = arith.constant 0 : index
    %c8_31 = arith.constant 8 : index
    %c0_32 = arith.constant 0 : index
    %39 = vector.load %arg9[%c0_30, %c8_31, %c0_32] : memref<1x16x256xf32, #tpu.memory_space<vmem>>, vector<1x8x256xf32>
    %40 = vector.shape_cast %39 : vector<1x8x256xf32> to vector<8x256xf32>
    %41 = vector.shape_cast %38 : vector<8x256xf32> to vector<1x8x256xf32>
    tpu.vector_store %arg9[%c0_30, %c8_31, %c0_32], %41 {strides = array<i32>} : memref<1x16x256xf32, #tpu.memory_space<vmem>>, vector<1x8x256xf32>,
    return
  }
  func.func @transform_0(%arg0: i32, %arg1: i32) -> (i32, i32, i32) {
    %c0_i32 = arith.constant 0 : i32
    %c0_i32_0 = arith.constant 0 : i32
    return %arg0, %c0_i32, %arg1 : i32, i32, i32
  }
  func.func @transform_1(%arg0: i32, %arg1: i32) -> (i32, i32, i32) {
    %c0_i32 = arith.constant 0 : i32
    %c0_i32_0 = arith.constant 0 : i32
    return %arg0, %c0_i32, %arg1 : i32, i32, i32
  }
  func.func @transform_2(%arg0: i32, %arg1: i32) -> (i32, i32) {
    %c0_i32 = arith.constant 0 : i32
    %c0_i32_0 = arith.constant 0 : i32
    %c0_i32_1 = arith.constant 0 : i32
    return %c0_i32, %c0_i32_0 : i32, i32
  }
  func.func @transform_3(%arg0: i32, %arg1: i32) -> (i32, i32) {
    %c0_i32 = arith.constant 0 : i32
    %c0_i32_0 = arith.constant 0 : i32
    %c0_i32_1 = arith.constant 0 : i32
    return %c0_i32, %c0_i32_0 : i32, i32
  }
  func.func @transform_4(%arg0: i32, %arg1: i32) -> (i32, i32) {
    %c0_i32 = arith.constant 0 : i32
    %c0_i32_0 = arith.constant 0 : i32
    %c0_i32_1 = arith.constant 0 : i32
    return %c0_i32, %c0_i32_0 : i32, i32
  }
  func.func @transform_5(%arg0: i32, %arg1: i32) -> (i32, i32) {
    %c0_i32 = arith.constant 0 : i32
    %c0_i32_0 = arith.constant 0 : i32
    %c0_i32_1 = arith.constant 0 : i32
    return %c0_i32, %c0_i32_0 : i32, i32
  }
  func.func @transform_6(%arg0: i32, %arg1: i32) -> (i32, i32, i32) {
    %c0_i32 = arith.constant 0 : i32
    %c0_i32_0 = arith.constant 0 : i32
    return %arg0, %c0_i32, %arg1 : i32, i32, i32
  }
  func.func @transform_7(%arg0: i32, %arg1: i32) -> (i32, i32, i32) {
    %c0_i32 = arith.constant 0 : i32
    %c0_i32_0 = arith.constant 0 : i32
    return %arg0, %c0_i32, %arg1 : i32, i32, i32
  }
}

</mosaic_0001>

<bundles_post_ra>
// kernel: tpu_custom_call.1
= control target key start
LH: loop header
LB: loop body
LE: loop exit
PB: predicated region body
PF: predicated region fallthrough
CT: control target
= control target key end

     0   :  { %s1414_s0 = inlined_call_operand.hbm [shape: f32[2,16,256], index: 0, kind: input, shape index: {}]   ;;  %s1415_s1 = inlined_call_operand.hbm [shape: f32[2,144,256], index: 1, kind: input, shape index: {}]   ;;  %s1416_s2 = inlined_call_operand.vmem [shape: f32[8,16], index: 2, kind: input, shape index: {}]   ;;  %s1417_s3 = inlined_call_operand.vmem [shape: f32[8,144], index: 3, kind: input, shape index: {}]   ;;  %s1418_s4 = inlined_call_operand.vmem [shape: f32[16,1], index: 4, kind: input, shape index: {}]   ;;  %s1419_s5 = inlined_call_operand.vmem [shape: f32[16,1], index: 5, kind: input, shape index: {}]   ;;  %s1420_s6 = inlined_call_operand.hbm [shape: f32[2,16,256], index: 6, kind: input, shape index: {}]   ;;  %s1421_s7 = inlined_call_operand.hbm [shape: f32[2,16,256], index: 7, kind: output, shape index: {}]  }
   0x1   :  { %1431 = sst [smem:[#allocation17_spill]] %s1415_s1 }
   0x2   :  { %1432 = sst [smem:[#allocation18_spill]] %s1421_s7 }
   0x3   :  { %12 = vsyncpa [#allocation3], 0 }
   0x4   :  { %14 = vsyncpa [#allocation3 + $0x1], 0 }
   0x5   :  { %15 = vsyncpa [#allocation6], 0 }
   0x6   :  { %17 = vsyncpa [#allocation6 + $0x1], 0 }
   0x7   :  { %18 = vsyncpa [#allocation4], 0 }
   0x8   :  { %20 = vsyncpa [#allocation4 + $0x1], 0  ;;  %s1132_s24 = smov 0   ;;  %s1134_s25 = smov 0  }
   0x9   :  { %s1136_s26 = smov 0   ;;  %s1138_s27 = smov 0  }
   0xa   :  { %s1140_s28 = smov 0   ;;  %s1142_s29 = smov 0  }
   0xb LB: > { %1433 = sst [smem:[#allocation12_spill]] %s1060_s24  ;;  %s1163_s30 = sadd.s32 4294967295, %s1080_s29   ;;  %s1080_s29 = sphi %s1142_s29, %s26_s29   ;;  %s1076_s28 = sphi %s1140_s28, %s1457_s28   ;;  %s1072_s27 = sphi %s1138_s27, %s1456_s27   ;;  %s1068_s26 = sphi %s1136_s26, %s1452_s26   ;;  %s1064_s25 = sphi %s1134_s25, %s1455_s25   ;;  %s1060_s24 = sphi %s1132_s24, %s1454_s24  }
   0xc   : > { %1434 = sst [smem:[#allocation13_spill]] %s1068_s26  ;;  %s805_s8 = sadd.s32 4294967294, %s1080_s29  }
   0xd   : > { %s38_s9 = sadd.s32 1, %s1076_s28  ;;  %s47_s10 = sadd.s32 1, %s1068_s26 }
   0xe   : > { %p40_p0 = scmp.ge.s32.totalorder %s38_s9, 2  ;;  %p54_p1 = scmp.ne.s32.totalorder %s1068_s26, %s1064_s25 }
   0xf   : > { %p55_p2 = scmp.eq.s32.totalorder %s1080_s29, 0  ;;  %p60_p3 = scmp.ne.s32.totalorder %s1064_s25, %s1060_s24 }
  0x10   : > { %s1459_s9 = smov (%p40_p0, %s38_s9), 0  ;;  %p61_p5 = scmp.eq.s32.totalorder %s1163_s30, 0 }
  0x11   : > { %1435 = sst [smem:[#allocation14_spill]] %s1459_s9  ;;  %p1175_p4 = por %p55_p2, %p54_p1 }
  0x12   : > { %s42_s12 = ssub.s32 %s1076_s28, %s1459_s9  ;;  %p226_p6 = scmp.eq.s32.totalorder %s1163_s30, 1 }
  0x13   : > { %p45_p7 = scmp.eq.s32.totalorder %s42_s12, 0  ;;  %p1183_p8 = por %p61_p5, %p60_p3 }
  0x14   : > { %p1187_p9 = por %p226_p6, %p54_p1  ;;  %p232_p10 = scmp.eq.s32.totalorder %s805_s8, 1 }
  0x15   : > { %s1192_s15 = scalar_select %p45_p7, %s1068_s26, %s47_s10  }
  0x16   : > { %p1194_p11 = por %p232_p10, %p60_p3  ;;  %p854_p13 = scmp.lt.s32.totalorder %s1080_s29, 2 }
  0x17   : > { %1439 = sst [smem:[#allocation15_spill]] %s1192_s15  ;;  %s1201_s17 = sand.u32 1, %s1068_s26  }
  0x18   : > { %s1440_s16 = scalar_select %p1194_p11, 1, 0 }
  0x19   : > { %p1205_p0 = pnand %p854_p13, %p1175_p4  ;;  %s287_s19 = sand.u32 1, %s1080_s29  }
  0x1a   : > { %1441 = sst [smem:[#allocation16_spill]] %s1440_s16  ;;  %s829_s20 = smul.u32 288, %s1201_s17 }
  0x1b   : > { %s830_s21 = smul.u32 4608, %s1076_s28  ;;  %p815_p1 = scmp.ge.s32.totalorder %s1080_s29, 1 }
  0x1c   : > { %s1443_s1 = sld [smem:[#allocation17_spill]]  ;;  %s291_s10 = scalar_lea.vmem [#allocation5], %s829_s20 }
  0x1d   : > { %s300_s12 = sshll.u32 %s291_s10, 4  ;;  %p331_p2 = scmp.lt.s32.totalorder %s1080_s29, 3  ;;  %s301_s12 = int_to_ptr.vmem [resolvable:$true] %s300_s12 }
  0x1e   : > { %s1217_s11 = scalar_lea.sflag [#allocation6], %s287_s19  ;;  %p914_p3 = pneg %p1205_p0 }
  0x1f   : > { %s925_s9 = scalar_lea.vmem %s301_s12, 4608  ;;  %s1082_s15 = smov [#allocation5]  }
  0x20   : > { %p926_p4 = scmp.ne.s32.totalorder %s301_s12, %s925_s9  ;;  %s930_s26 = sshll.u32 %s1082_s15, 4  ;;  %s931_s26 = int_to_ptr.vmem [resolvable:$false] %s930_s26 }
  0x21   : > { %s932_s16 = scalar_lea.vmem %s931_s26, 9216  ;;  %p933_p7 = scmp.lt.s32.totalorder %s301_s12, %s931_s26 }
  0x22   : > { %s299_s8 = scalar_lea.hbm %s1443_s1, %s830_s21  ;;  %p928_p5 = pnand %p926_p4, %p914_p3 }
  0x23   : > { %p934_p10 = scmp.lt.s32.totalorder %s932_s16, %s925_s9 }
  0x24   : > { %p929_p6 = pneg %p928_p5 }
  0x25   : > { %p935_p13 = por %p934_p10, %p933_p7 }
  0x27   : > { %p936_p12 = pnand %p935_p13, %p929_p6 }
  0x29   : > { %939 = shalt.err (!%p936_p12)
}
  0x2a   : > { %s1427_s20 = smov 256   ;;  %s1429_s19 = smov 16  }
  0x2b   : > { %846 = dma.hbm_to_vmem [thread:$0]  (!%p1205_p0), %s299_s8, 4608, %s301_s12, %s1217_s11, %s1427_s20, %s1427_s20, %s1429_s19  }
  0x2c   : > { %p1234_p4 = pnand %p815_p1, %p331_p2  ;;  %s808_s9 = sshll.u32 %s1201_s17, 5 }
  0x2d   : > { %s826_s15 = sshll.u32 %s1076_s28, 9  ;;  %s268_s23 = scalar_lea.vmem [#allocation2], %s808_s9 }
  0x2e   : > { %s276_s22 = scalar_lea.hbm %s1414_s0, %s826_s15  ;;  %s277_s10 = sshll.u32 %s268_s23, 4  ;;  %s278_s10 = int_to_ptr.vmem [resolvable:$true] %s277_s10 }
  0x2f   : > { %s1246_s7 = scalar_lea.hbm %s1420_s6, %s826_s15  ;;  %s265_s8 = scalar_lea.sflag [#allocation3], %s1201_s17 }
  0x30   : > { %s953_s12 = scalar_lea.vmem %s278_s10, 512  ;;  %s1085_s20 = smov [#allocation2]  }
  0x31   : > { %p954_p12 = scmp.ne.s32.totalorder %s278_s10, %s953_s12  ;;  %s958_s19 = sshll.u32 %s1085_s20, 4  ;;  %s959_s19 = int_to_ptr.vmem [resolvable:$false] %s958_s19 }
  0x32   : > { %s960_s16 = scalar_lea.vmem %s959_s19, 1024  ;;  %p961_p5 = scmp.lt.s32.totalorder %s278_s10, %s959_s19 }
  0x33   : > { %p956_p1 = pnand %p954_p12, %p914_p3  ;;  %p962_p6 = scmp.lt.s32.totalorder %s960_s16, %s953_s12 }
  0x35   : > { %p957_p2 = pneg %p956_p1  ;;  %p963_p7 = por %p962_p6, %p961_p5 }
  0x37   : > { %p964_p10 = pnand %p963_p7, %p957_p2 }
  0x39   : > { %967 = shalt.err (!%p964_p10)
}
  0x3a   : > { %s1445_s1 = smov 16   ;;  %s1446_s24 = smov 256  }
  0x3b   : > { %843 = dma.hbm_to_vmem [thread:$0]  (!%p1205_p0), %s276_s22, 512, %s278_s10, %s265_s8, %s1446_s24, %s1446_s24, %s1445_s1  }
  0x3c   : > { %s314_s17 = scalar_lea.vmem [#allocation7], %s808_s9  ;;  %s1086_s20 = smov [#allocation7]  }
  0x3d   : > { %s323_s15 = sshll.u32 %s314_s17, 4  ;;  %s986_s19 = sshll.u32 %s1086_s20, 4  ;;  %s324_s15 = int_to_ptr.vmem [resolvable:$true] %s323_s15  ;;  %s987_s19 = int_to_ptr.vmem [resolvable:$false] %s986_s19 }
  0x3e   : > { %s981_s21 = scalar_lea.vmem %s324_s15, 512  ;;  %s988_s23 = scalar_lea.vmem %s987_s19, 1024 }
  0x3f   : > { %p982_p13 = scmp.ne.s32.totalorder %s324_s15, %s981_s21  ;;  %p989_p2 = scmp.lt.s32.totalorder %s324_s15, %s987_s19 }
  0x40   : > { %p990_p5 = scmp.lt.s32.totalorder %s988_s23, %s981_s21 }
  0x41   : > { %p984_p12 = pnand %p982_p13, %p914_p3 }
  0x42   : > { %p991_p6 = por %p990_p5, %p989_p2 }
  0x43   : > { %p985_p1 = pneg %p984_p12 }
  0x45   : > { %p992_p7 = pnand %p991_p6, %p985_p1 }
  0x47   : > { %995 = shalt.err (!%p992_p7)
}
  0x48   : > { %849 = dma.hbm_to_vmem [thread:$0]  (!%p1205_p0), %s1246_s7, 512, %s324_s15, %s1217_s11, %s1446_s24, %s1446_s24, %s1445_s1  }
  0x49   : > { %335 = sbr.rel (%p1234_p4) target bundleno = 339 (0x153), region = 48  ;;  %s1270_s9 = sand.u32 (!%p1234_p4), 1, %s1064_s25  }
  0x4a   : > { %s1273_s22 = sshll.u32 (!%p1234_p4), %s1270_s9, 5  ;;  %s338_s10 = scalar_lea.sflag (!%p1234_p4), [#allocation3], %s1270_s9 }
  0x4b   : > { %s1277_s18 = scalar_lea.vmem (!%p1234_p4), [#allocation2], %s1273_s22 }
  0x4e   : > { %1047 = dma.done.wait (%p1183_p8), %s338_s10, 512  }
  0x4f   : > { %1049 = vsyncadd (%p1183_p8), %s338_s10, 4294966784  ;;  %s346_s7 = sand.u32 1, %s1163_s30   ;;  %s831_s11 = smul.u32 288, %s1270_s9 }
  0x50   : > { %s347_s26 = scalar_lea.sflag [#allocation6], %s346_s7 }
  0x51   : > { %s1285_s8 = scalar_lea.vmem [#allocation5], %s831_s11 }
  0x52   : > { %1051 = dma.done.wait (%p1183_p8), %s347_s26, 5120  }
  0x53   : > { %1053 = vsyncadd (%p1183_p8), %s347_s26, 4294962176  ;;  %v1087_v0 = vmov 0.0   ;;  %v1088_v1 = vmov 0   ;;  %v545_v2 = vld [vmem:[%s1285_s8 + $0xf8] sm:$0xff]  ;;  %v544_v3 = vld [vmem:[%s1285_s8 + $0xf0] sm:$0xff]  ;;  %vm409_vm0 = vcmask 130048  }
  0x54   : > { %477 = vmatprep.mubr.f32.mxu0 %v1087_v0  ;;  %910 = vset.pattern.permute.xlu0 %v1088_v1  ;;  %v543_v4 = vld [vmem:[%s1285_s8 + $0xe8] sm:$0xff]  ;;  %v542_v5 = vld [vmem:[%s1285_s8 + $0xe0] sm:$0xff]  ;;  %v541_v6 = vld [vmem:[%s1285_s8 + $0xd8] sm:$0xff]  ;;  %s1353_s7 = scalar_lea.vmem [#allocation7], %s1273_s22  ;;  %s399_s11 = scalar_lea.vmem [#allocation8], %s1273_s22 }
  0x55   : > { %911 = vset.pattern.permute.xlu1 %v1088_v1  ;;  %553 = vmatprep.subr.mxu1 %v545_v2  ;;  %v540_v7 = vld [vmem:[%s1285_s8 + $0xd0] sm:$0xff]  ;;  %v539_v8 = vld [vmem:[%s1285_s8 + $0xc8] sm:$0xff]  ;;  %v538_v9 = vld [vmem:[%s1285_s8 + $0xc0] sm:$0xff]  ;;  %s668_s26 = sshll.u32 %s399_s11, 4  ;;  %s828_s22 = sshll.u32 %s1072_s27, 9  ;;  %s1366_s26 = int_to_ptr.vmem [resolvable:$true] %s668_s26 }
  0x56   : > { %554 = vmatpush1.msra.mxu1 %v544_v3  ;;  %v537_v10 = vld [vmem:[%s1285_s8 + $0xb8] sm:$0xff]  ;;  %v536_v11 = vld [vmem:[%s1285_s8 + $0xb0] sm:$0xff]  ;;  %v535_v12 = vld [vmem:[%s1285_s8 + $0xa8] sm:$0xff]  ;;  %s1447_s13 = sld [smem:[#allocation18_spill]]  ;;  %s653_s27 = scalar_lea.sflag [#allocation4], %s1270_s9 }
  0x57   : > { %555 = vmatprep.subr.mxu1 %v543_v4  ;;  %v408_v13 = vld [vmem:[%s1277_s18 + $0x18] sm:$0xff]  ;;  %v534_v14 = vld [vmem:[%s1285_s8 + $0xa0] sm:$0xff]  ;;  %v407_v15 = vld [vmem:[%s1277_s18 + $0x10] sm:$0xff]  ;;  %s996_s16 = scalar_lea.vmem %s1366_s26, 512  ;;  %s1089_s1 = smov [#allocation8]  }
  0x58   : > { %556 = vmatpush1.msra.mxu1 %v542_v5  ;;  %441 = vmatprep.subr.mxu0 %v408_v13  ;;  %v533_v16 = vld [vmem:[%s1285_s8 + $0x98] sm:$0xff]  ;;  %v406_v17 = vld [vmem:[%s1277_s18 + $0x8] sm:$0xff]  ;;  %v405_v18 = vld [vmem:[%s1277_s18] sm:$0xff]  ;;  %p997_p8 = scmp.ne.s32.totalorder %s1366_s26, %s996_s16  ;;  %s1000_s24 = sshll.u32 %s1089_s1, 4  ;;  %s1001_s24 = int_to_ptr.vmem [resolvable:$false] %s1000_s24 }
  0x59   : > { %557 = vmatprep.subr.mxu1 %v541_v6  ;;  %442 = vmatpush1.msra.mxu0 %v407_v15  ;;  %v532_v19 = vld [vmem:[%s1285_s8 + $0x90] sm:$0xff]  ;;  %v404_v20 = vld [vmem:[%s1416_s2] sm:$0xff]  ;;  %v531_v21 = vld [vmem:[%s1285_s8 + $0x88] sm:$0xff]  ;;  %s1002_s17 = scalar_lea.vmem %s1001_s24, 1024  ;;  %p1003_p4 = scmp.lt.s32.totalorder %s1366_s26, %s1001_s24 }
  0x5a   : > { %558 = vmatpush1.msra.mxu1 %v540_v7  ;;  %443 = vmatprep.subr.mxu0 %v406_v17  ;;  %v530_v22 = vld [vmem:[%s1285_s8 + $0x80] sm:$0xff]  ;;  %v513_v23 = vld [vmem:[%s1417_s3 + $0x8] sm:$0xff]  ;;  %v529_v24 = vld [vmem:[%s1285_s8 + $0x78] sm:$0xff]  ;;  %p998_p0 = pnand %p997_p8, %p1187_p9  ;;  %p1004_p10 = scmp.lt.s32.totalorder %s1002_s17, %s996_s16 }
  0x5b   : > { %559 = vmatprep.subr.mxu1 %v539_v8  ;;  %444 = vmatpush1.msra.mxu0 %v405_v18  ;;  %v484_v25 = vld [vmem:[%s1418_s4] sm:$0xff]  ;;  %v528_v27 = vld [vmem:[%s1285_s8 + $0x70] sm:$0xff]  ;;  %v527_v28 = vld [vmem:[%s1285_s8 + $0x68] sm:$0xff] }
  0x5c   : > { %560 = vmatpush1.msra.mxu1 %v538_v9  ;;  %819 = vmatmul.mubr.msk.f32.vlgmr.msra.gmra.mxu0 %vm409_vm0, %v404_v20  ;;  %v492_v26 = vld [vmem:[%s1419_s5] sm:$0xff]  ;;  %v624_v29 = vld [vmem:[%s1418_s4 + $0x8] sm:$0xff]  ;;  %v525_v32 = vld [vmem:[%s1285_s8 + $0x58] sm:$0xff]  ;;  %s1364_s12 = scalar_lea.hbm %s1447_s13, %s828_s22  ;;  %p999_p3 = pneg %p998_p0 }
  0x5d   : > { %561 = vmatprep.subr.mxu1 %v537_v10  ;;  %820 = vmatprep.mubr.msk.f32.mxu1 %vm409_vm0, %v513_v23  ;;  %v526_v30 = vld [vmem:[%s1285_s8 + $0x60] sm:$0xff]  ;;  %v632_v31 = vld [vmem:[%s1419_s5 + $0x8] sm:$0xff]  ;;  %v524_v33 = vld [vmem:[%s1285_s8 + $0x50] sm:$0xff]  ;;  %p1005_p13 = por %p1004_p10, %p1003_p4 }
  0x5e   : > { %562 = vmatpush1.msra.mxu1 %v536_v11  ;;  %487 = vperm.xlu0 %910, %v484_v25   ;;  %v523_v34 = vld [vmem:[%s1285_s8 + $0x48] sm:$0xff]  ;;  %v522_v35 = vld [vmem:[%s1285_s8 + $0x40] sm:$0xff]  ;;  %v521_v36 = vld [vmem:[%s1285_s8 + $0x38] sm:$0xff] }
  0x5f   : > { %563 = vmatprep.subr.mxu1 %v535_v12  ;;  %495 = vperm.xlu1 %911, %v492_v26   ;;  %v520_v37 = vld [vmem:[%s1285_s8 + $0x30] sm:$0xff]  ;;  %v519_v38 = vld [vmem:[%s1285_s8 + $0x28] sm:$0xff]  ;;  %v518_v39 = vld [vmem:[%s1285_s8 + $0x20] sm:$0xff]  ;;  %p1006_p12 = pnand %p1005_p13, %p999_p3 }
  0x60   : > { %564 = vmatpush1.msra.mxu1 %v534_v14  ;;  %v517_v40 = vld [vmem:[%s1285_s8 + $0x18] sm:$0xff]  ;;  %v516_v41 = vld [vmem:[%s1285_s8 + $0x10] sm:$0xff]  ;;  %v515_v42 = vld [vmem:[%s1285_s8 + $0x8] sm:$0xff] }
  0x61   : > { %565 = vmatprep.subr.mxu1 %v533_v16  ;;  %v514_v43 = vld [vmem:[%s1285_s8] sm:$0xff]  ;;  %v549_v44 = vld [vmem:[%s1285_s8 + $0x118] sm:$0xff]  ;;  %v548_v45 = vld [vmem:[%s1285_s8 + $0x110] sm:$0xff] }
  0x62   : > { %566 = vmatpush1.msra.mxu1 %v532_v19  ;;  %627 = vperm.xlu0 %910, %v624_v29   ;;  %v547_v46 = vld [vmem:[%s1285_s8 + $0x108] sm:$0xff]  ;;  %v546_v47 = vld [vmem:[%s1285_s8 + $0x100] sm:$0xff]  ;;  %v646_v8 = vld [vmem:[%s1353_s7 + $0x10] sm:$0xff] }
  0x63   : > { %567 = vmatprep.subr.mxu1 %v531_v21  ;;  %635 = vperm.xlu1 %911, %v632_v31   ;;  %v512_v48 = vld [vmem:[%s1417_s3] sm:$0xff]  ;;  %v507_v61 = vld [vmem:[%s1353_s7 + $0x8] sm:$0xff]  ;;  %v647_v13 = vld [vmem:[%s1353_s7 + $0x18] sm:$0xff] }
  0x64   : > { %568 = vmatpush1.msra.mxu1 %v530_v22  ;;  %v506_v56 = vld [vmem:[%s1353_s7] sm:$0xff] }
  0x65   : > { %569 = vmatprep.subr.mxu1 %v529_v24 }
  0x66   : > { %570 = vmatpush1.msra.mxu1 %v528_v27 }
  0x67   : > { %571 = vmatprep.subr.mxu1 %v527_v28 }
  0x68   : > { %572 = vmatpush1.msra.mxu1 %v526_v30 }
  0x69   : > { %573 = vmatprep.subr.mxu1 %v525_v32 }
  0x6a   : > { %574 = vmatpush1.msra.mxu1 %v524_v33 }
  0x6b   : > { %575 = vmatprep.subr.mxu1 %v523_v34 }
  0x6c   : > { %576 = vmatpush1.msra.mxu1 %v522_v35 }
  0x6d   : > { %577 = vmatprep.subr.mxu1 %v521_v36 }
  0x6e   : > { %578 = vmatpush1.msra.mxu1 %v520_v37 }
  0x6f   : > { %579 = vmatprep.subr.mxu1 %v519_v38 }
  0x70   : > { %580 = vmatpush1.msra.mxu1 %v518_v39 }
  0x71   : > { %581 = vmatprep.subr.mxu1 %v517_v40 }
  0x72   : > { %582 = vmatpush1.msra.mxu1 %v516_v41 }
  0x73   : > { %583 = vmatprep.subr.mxu1 %v515_v42 }
  0x74   : > { %584 = vmatpush1.msra.mxu1 %v514_v43 }
  0x75   : > { %613 = vmatprep.subr.mxu1 %v549_v44 }
  0x76   : > { %614 = vmatpush2.msra.mxu1 %v548_v45 }
  0x77   : > { %615 = vmatprep.subr.mxu1 %v547_v46 }
  0x78   : > { %616 = vmatpush2.msra.mxu1 %v546_v47 }
  0x79   : > { %618 = vmatmul.mubr.f32.vlgmr.msra.gmra.mxu1 %v512_v48 }
  0xd9   : > { %v488_v49 = vpop.permute.xlu0 %487 }
  0xda   : > { %v496_v52 = vpop.permute.xlu1 %495 }
  0xdd   : > { %v628_v1 = vpop.permute.xlu0 %627 }
  0xde   : > { %v636_v4 = vpop.permute.xlu1 %635 }
 0x11c   : > { %v479_v50 = vpop.f32.mrf.mxu0 }
 0x11d   : > { %v490_v51 = vmul.f32 %v488_v49, %v479_v50 }
 0x11e   : > { %v481_v53 = vpop.f32.mrf.mxu0 }
 0x11f   : > { %v498_v54 = vadd.f32 %v496_v52, %v490_v51  ;;  %v491_v55 = vmul.f32 %v488_v49, %v481_v53 }
 0x121   : > { %vm500_vm1 = vcmp.ge.f32.partialorder %v498_v54, 0.0  ;;  %v502_v57 = vmul.f32 0.1, %v498_v54  ;;  %v499_v58 = vadd.f32 %v496_v52, %v491_v55 }
 0x123   : > { %v504_v59 = vsel %vm500_vm1, %v498_v54, %v502_v57  ;;  %vm501_vm2 = vcmp.ge.f32.partialorder %v499_v58, 0.0  ;;  %v503_v60 = vmul.f32 0.1, %v499_v58 }
 0x124   : > { %v508_v62 = vadd.f32 %v506_v56, %v504_v59 }
 0x125   : > { %v505_v63 = vsel %vm501_vm2, %v499_v58, %v503_v60 }
 0x126   : > { %510 = vst [vmem:[%s399_s11] sm:$0xff] %v508_v62  ;;  %v509_v0 = vadd.f32 %v507_v61, %v505_v63 }
 0x128   : > { %511 = vst [vmem:[%s399_s11 + $0x8] sm:$0xff] %v509_v0 }
 0x139   : > { %v619_v2 = vpop.f32.mrf.mxu1 }
 0x13a   : > { %v630_v3 = vmul.f32 %v628_v1, %v619_v2 }
 0x13b   : > { %v621_v5 = vpop.f32.mrf.mxu1 }
 0x13c   : > { %v638_v6 = vadd.f32 %v636_v4, %v630_v3  ;;  %v631_v7 = vmul.f32 %v628_v1, %v621_v5 }
 0x13e   : > { %vm640_vm3 = vcmp.ge.f32.partialorder %v638_v6, 0.0  ;;  %v642_v9 = vmul.f32 0.1, %v638_v6  ;;  %v639_v10 = vadd.f32 %v636_v4, %v631_v7 }
 0x140   : > { %v644_v11 = vsel %vm640_vm3, %v638_v6, %v642_v9  ;;  %vm641_vm4 = vcmp.ge.f32.partialorder %v639_v10, 0.0  ;;  %v643_v12 = vmul.f32 0.1, %v639_v10 }
 0x141   : > { %v648_v14 = vadd.f32 %v646_v8, %v644_v11 }
 0x142   : > { %v645_v15 = vsel %vm641_vm4, %v639_v10, %v643_v12 }
 0x143   : > { %650 = vst [vmem:[%s399_s11 + $0x10] sm:$0xff] %v648_v14  ;;  %v649_v16 = vadd.f32 %v647_v13, %v645_v15 }
 0x145   : > { %651 = vst [vmem:[%s399_s11 + $0x18] sm:$0xff] %v649_v16 }
 0x146   : > { %1009 = shalt.err (!%p1006_p12)
}
 0x147   : > { %s1010_s15 = scalar_lea.hbm %s1364_s12, 512  ;;  %s1014_s19 = scalar_lea.hbm %s1447_s13, 1024 }
 0x148   : > { %p1011_p1 = scmp.ne.s32.totalorder %s1364_s12, %s1010_s15  ;;  %p1015_p6 = scmp.lt.s32.totalorder %s1364_s12, %s1447_s13 }
 0x149   : > { %p1016_p7 = scmp.lt.s32.totalorder %s1014_s19, %s1010_s15 }
 0x14a   : > { %p1012_p2 = pnand %p1011_p1, %p1187_p9 }
 0x14b   : > { %p1017_p8 = por %p1016_p7, %p1015_p6 }
 0x14c   : > { %p1013_p5 = pneg %p1012_p2 }
 0x14e   : > { %p1018_p0 = pnand %p1017_p8, %p1013_p5 }
 0x150   : > { %1021 = shalt.err (!%p1018_p0)
}
 0x151   : > { %s1090_s18 = smov 256   ;;  %s1091_s7 = smov 16  }
 0x152   : > { %838 = dma.vmem_to_hbm [thread:$0]  (%p1187_p9), %s1366_s26, 512, %s1364_s12, %s653_s27, %s1090_s18, %s1090_s18, %s1091_s7  }
 0x153 PF: > { %s1448_s11 = sld [smem:[#allocation12_spill]]  ;;  %p1450_p3 = scmp.ge.s32.totalorder %s1080_s29, 2 }
 0x155   : > { %p851_p4 = pnand %p1450_p3, %p1194_p11 }
 0x157   : > { %p852_p10 = pneg %p851_p4 }
 0x159   : > { %s683_s8 = sand.u32 1, %s1448_s11  }
 0x15a   : > { %s684_s30 = scalar_lea.sflag [#allocation4], %s683_s8 }
 0x15b   : > { %1055 = dma.done.wait (%p852_p10), %s684_s30, 512  }
 0x15c   : > { %1057 = vsyncadd (%p852_p10), %s684_s30, 4294966784  ;;  %s26_s29 = sadd.s32 1, %s1080_s29   ;;  %s1451_s16 = sld [smem:[#allocation13_spill]] }
 0x15d   : > { %p23_p13 = scmp.ge.s32.totalorder %s26_s29, 4   ;;  %s1452_s26 = sld [smem:[#allocation15_spill]] }
 0x15e   : > { %s1453_s14 = sld [smem:[#allocation14_spill]]  ;;  %s1454_s24 = smov %s1064_s25 }
 0x15f   : > { %s1456_s27 = smov %s1076_s28 }
 0x160   :  { %25 = sbr.rel (!%p23_p13) target bundleno = 11 (0xb), region = 117 }
 0x162   : > { %s1455_s25 = smov %s1451_s16 }
 0x164   : > { %s1457_s28 = smov %s1453_s14 }
 0x165   :  { %689 = vsyncpa [#allocation3], 1 }
 0x166   :  { %691 = vsyncpa [#allocation3 + $0x1], 1 }
 0x167   :  { %692 = vsyncpa [#allocation6], 1 }
 0x168   :  { %694 = vsyncpa [#allocation6 + $0x1], 1 }
 0x169   :  { %695 = vsyncpa [#allocation4], 1 }
 0x16a   :  { %697 = vsyncpa [#allocation4 + $0x1], 1 }

</bundles_post_ra>
